<compile_context>
chip_gen: v6e
topology: v6e:2x2x1
jax: 0.10.0
libtpu: 0.0.40
codegen_flags: <defaults>
</compile_context>

<pallas_src>
import math

import jax
import jax.numpy as jnp
from jax.experimental import pallas as pl
from jax.experimental.pallas import tpu as pltpu


def _make_conv_silu_kernel(n_pairs: int, kh: int):
    """conv2d (stride=1, dil=1) + bias + SiLU over one (batch, row-tile) block."""

    def kernel(x_ref, wp_ref, wt_ref, b_ref, o_ref):
        # x_ref : (1, Hp, Kpad)             zero-padded image, batch n (resident)
        # wp_ref: (n_pairs, 2*Kpad, WCout)  paired Toeplitz weights (resident)
        # wt_ref: (Kpad, WCout)             last (odd) tap weights (resident)
        # b_ref : (1, WCout)                lane-dense bias, f32
        # o_ref : (1, tH, WCout)            lane-dense output row tile
        t = pl.program_id(1)
        _, tH, _ = o_ref.shape

        row0 = pl.multiple_of(t * tH, tH)
        # one dynamic-start window load covering the row halo
        xwin = x_ref[0, pl.ds(row0, tH + kh - 1), :]            # (tH+kh-1, Kpad)

        def pair_act(i):
            # taps (2i, 2i+1) side by side on the lane axis -> K = 2*Kpad
            return jnp.concatenate(
                [xwin[2 * i:2 * i + tH, :],
                 xwin[2 * i + 1:2 * i + 1 + tH, :]], axis=1)

        # acc initialised with the first fat matmul + bias (no zeros fill)
        acc = jnp.dot(pair_act(0), wp_ref[0],
                      preferred_element_type=jnp.float32) + b_ref[...]
        for i in range(1, n_pairs):
            acc = acc + jnp.dot(pair_act(i), wp_ref[i],
                                preferred_element_type=jnp.float32)
        # odd tail tap (index kh-1), K = Kpad
        acc = acc + jnp.dot(xwin[kh - 1:kh - 1 + tH, :], wt_ref[...],
                            preferred_element_type=jnp.float32)

        out = acc * jax.nn.sigmoid(acc)                         # SiLU in f32
        o_ref[0] = out.astype(o_ref.dtype)

    return kernel


def conv_layer_forward(x_nchw, weight_oihw, bias, *, padding=None,
                       row_tile=None, compute_dtype=jnp.bfloat16):
    """ConvLayer.forward: Conv2d (stride=1, dilation=1) + bias + SiLU."""
    # TODO(synk): stride != 1, dilation != 1 and even kernel sizes not implemented.
    N, Cin, H, W = x_nchw.shape
    Cout, _, KH, KW = weight_oihw.shape
    assert KH % 2 == 1 and KH >= 3, "odd kernel_size >= 3 only"
    p = KH // 2 if padding is None else int(padding)
    Hp = H + 2 * p
    WCout = W * Cout
    Kpad = max(128, ((W * Cin + 127) // 128) * 128)    # lane-dense contraction dim
    n_pairs = KH // 2

    # ---- activations: NCHW -> (N, Hp, Kpad); single pad op (H halo + lane pad) ----
    xc = x_nchw.astype(compute_dtype)
    x_nhwc = jnp.transpose(xc, (0, 2, 3, 1)).reshape(N, H, W * Cin)
    x_flat = jnp.pad(x_nhwc, ((0, 0), (p, p), (0, Kpad - W * Cin)))

    # ---- Toeplitz-expanded weights against the *unpadded* W axis (tiny, once) ----
    # T[kh, xin*Cin+ci, xout*Cout+co] = W[co, ci, kh, xin-xout+p]   (0 if kw invalid)
    w_hwio = jnp.transpose(weight_oihw, (2, 3, 1, 0))           # (KH, KW, Cin, Cout)
    xin = jnp.arange(W)[:, None]
    xout = jnp.arange(W)[None, :]
    kw_idx = xin - xout + p                                     # (W, W)
    valid = ((kw_idx >= 0) & (kw_idx < KW)).astype(w_hwio.dtype)
    kw_c = jnp.clip(kw_idx, 0, KW - 1)
    gathered = w_hwio[:, kw_c] * valid[None, :, :, None, None]  # (KH, W, W, Cin, Cout)
    w_toep = jnp.transpose(gathered, (0, 1, 3, 2, 4)).reshape(KH, W * Cin, WCout)
    w_toep = jnp.pad(w_toep, ((0, 0), (0, Kpad - W * Cin), (0, 0)))
    # merge pairs of taps -> K = 2*Kpad per MXU push; keep the odd tap separate
    w_pairs = w_toep[:2 * n_pairs].reshape(n_pairs, 2 * Kpad, WCout).astype(compute_dtype)
    w_tail = w_toep[KH - 1].astype(compute_dtype)               # (Kpad, WCout)

    # lane-dense bias (column = xout*Cout + co), kept in f32
    b_lane = jnp.tile(bias.astype(jnp.float32), W).reshape(1, WCout)

    # ---- row tiling: as large as fits (capped at 128 rows per matmul M) ----
    if row_tile is None:
        if H <= 128:
            row_tile = H
        else:
            row_tile = next((t for t in (128, 64, 32, 16, 8) if H % t == 0), H)
    tH = row_tile
    assert H % tH == 0, "row_tile must divide H"
    nT = H // tH
    # TODO(synk): for tH > 128, apply bias+SiLU in 64-row chunks to bound vreg live range.

    bpe = jnp.dtype(compute_dtype).itemsize
    flops = 2 * N * H * W * Cout * Cin * KH * KW
    bytes_accessed = int(N * Hp * Kpad * bpe + KH * Kpad * WCout * bpe
                         + WCout * 4 + N * H * WCout * 4)
    # VMEM: double-buffered blocks + headroom, capped at 48 MiB (v7x has 64 MiB phys).
    blk_bytes = (Hp * Kpad * bpe + (n_pairs * 2 + 1) * Kpad * WCout * bpe
                 + WCout * 4 + tH * WCout * 4)
    vmem_limit = int(min(max(8 * blk_bytes, 32 * 1024 * 1024), 48 * 1024 * 1024))

    kernel = _make_conv_silu_kernel(n_pairs, KH)

    out_flat = pl.pallas_call(
        kernel,
        out_shape=jax.ShapeDtypeStruct((N, H, WCout), x_nchw.dtype),
        grid=(N, nT),
        in_specs=[
            # full padded image per batch element, reused across all row tiles
            pl.BlockSpec((1, Hp, Kpad), lambda n, t: (n, 0, 0)),
            # resident Toeplitz weights (paired taps + tail tap) and bias
            pl.BlockSpec((n_pairs, 2 * Kpad, WCout), lambda n, t: (0, 0, 0)),
            pl.BlockSpec((Kpad, WCout), lambda n, t: (0, 0)),
            pl.BlockSpec((1, WCout), lambda n, t: (0, 0)),
        ],
        out_specs=pl.BlockSpec((1, tH, WCout), lambda n, t: (n, t, 0)),
        compiler_params=pltpu.CompilerParams(
            dimension_semantics=("parallel", "parallel"),
            vmem_limit_bytes=vmem_limit),
        cost_estimate=pl.CostEstimate(
            flops=flops,
            transcendentals=N * H * WCout,
            bytes_accessed=bytes_accessed),
    )(x_flat, w_pairs, w_tail, b_lane)

    out_nhwc = out_flat.reshape(N, H, W, Cout)
    return jnp.transpose(out_nhwc, (0, 3, 1, 2))                # back to NCHW


if __name__ == "__main__":
    key = jax.random.PRNGKey(0)
    kx, kw, kb = jax.random.split(key, 3)

    # ConvLayer(channels=(4, 8), kernel_size=7, stride=1, dim=2) at small shapes
    N, Cin, Cout, H, W = 2, 4, 8, 16, 16
    KH = KW = 7
    PAD = KH // 2  # padding=None -> floor(kernel/2) = 3

    x = jax.random.normal(kx, (N, Cin, H, W), jnp.float32)

    # deterministic xavier_normal_-style weight; nonzero bias to exercise b_lane order
    fan_in = Cin * KH * KW
    fan_out = Cout * KH * KW
    std = math.sqrt(2.0 / (fan_in + fan_out))
    weight = std * jax.random.normal(kw, (Cout, Cin, KH, KW), jnp.float32)
    bias = 0.1 * jax.random.normal(kb, (Cout,), jnp.float32)

    # reference: XLA conv + bias + SiLU (same semantics as nn.Conv2d forward)
    ref = jax.lax.conv_general_dilated(
        x, weight, window_strides=(1, 1), padding=((PAD, PAD), (PAD, PAD)),
        dimension_numbers=("NCHW", "OIHW", "NCHW"))
    ref = ref + bias.reshape(1, Cout, 1, 1)
    ref = ref * jax.nn.sigmoid(ref)

    # exact f32 data-movement path
    out_f32 = conv_layer_forward(x, weight, bias, padding=PAD,
                                 compute_dtype=jnp.float32)
    out_f32 = jax.block_until_ready(out_f32)
    assert out_f32.shape == (N, Cout, H, W)
    assert jnp.allclose(out_f32, ref, atol=1e-4, rtol=1e-4), "f32 mismatch vs reference"

    # bf16 data-movement path (f32 accumulation) — looser tolerance
    out_bf16 = conv_layer_forward(x, weight, bias, padding=PAD,
                                  compute_dtype=jnp.bfloat16)
    out_bf16 = jax.block_until_ready(out_bf16)
    assert out_bf16.shape == (N, Cout, H, W)
    assert jnp.allclose(out_bf16, ref, atol=3e-2, rtol=3e-2), "bf16 mismatch vs reference"

    print("KERNEL_OK")
</pallas_src>

<mosaic_0001>
module attributes {stable_mosaic.version = 11 : i64} {
  func.func @kernel(%arg0: i32, %arg1: i32, %arg2: memref<1x22x128xf32, #tpu.memory_space<vmem>>, %arg3: memref<3x256x128xf32, #tpu.memory_space<vmem>>, %arg4: memref<128x128xf32, #tpu.memory_space<vmem>>, %arg5: memref<1x128xf32, #tpu.memory_space<vmem>>, %arg6: memref<1x16x128xf32, #tpu.memory_space<vmem>>) attributes {dimension_semantics = [#tpu.dimension_semantics<parallel>, #tpu.dimension_semantics<parallel>], iteration_bounds = array<i64: 2, 1>, scalar_prefetch = 0 : i64, scratch_operands = 0 : i64, tpu.core_type = #tpu.core_type<tc>, window_params = [{transform_indices = @transform_0, window_bounds = array<i64: 1, 22, 128>}, {pipeline_mode = #tpu.pipeline_mode<synchronous>, transform_indices = @transform_1, window_bounds = array<i64: 3, 256, 128>}, {pipeline_mode = #tpu.pipeline_mode<synchronous>, transform_indices = @transform_2, window_bounds = array<i64: 128, 128>}, {pipeline_mode = #tpu.pipeline_mode<synchronous>, transform_indices = @transform_3, window_bounds = array<i64: 1, 128>}, {transform_indices = @transform_4, window_bounds = array<i64: 1, 16, 128>}]} {
    %c16_i32 = arith.constant 16 : i32
    %0 = arith.muli %arg1, %c16_i32 : i32
    %1 = tpu.assume_multiple %0, 16 : i32
    %c0 = arith.constant 0 : index
    %2 = arith.index_cast %1 : i32 to index
    %c0_0 = arith.constant 0 : index
    %3 = vector.load %arg2[%c0, %2, %c0_0] : memref<1x22x128xf32, #tpu.memory_space<vmem>>, vector<1x22x128xf32>
    %4 = vector.shape_cast %3 : vector<1x22x128xf32> to vector<22x128xf32>
    %5 = vector.extract_strided_slice %4 {offsets = [0, 0], sizes = [16, 128], strides = [1, 1]} : vector<22x128xf32> to vector<16x128xf32>
    %6 = vector.extract_strided_slice %4 {offsets = [1, 0], sizes = [16, 128], strides = [1, 1]} : vector<22x128xf32> to vector<16x128xf32>
    %7 = tpu.concatenate %5, %6 in 1 : vector<16x128xf32>, vector<16x128xf32> -> vector<16x256xf32>
    %c0_1 = arith.constant 0 : index
    %c0_2 = arith.constant 0 : index
    %c0_3 = arith.constant 0 : index
    %8 = vector.load %arg3[%c0_1, %c0_2, %c0_3] : memref<3x256x128xf32, #tpu.memory_space<vmem>>, vector<1x256x128xf32>
    %9 = vector.shape_cast %8 : vector<1x256x128xf32> to vector<256x128xf32>
    %cst = arith.constant dense<0.000000e+00> : vector<16x128xf32>
    %10 = tpu.matmul %7, %9, %cst {dimension_numbers = #tpu.dot_dimension_numbers<[1], [0], [0], [1], [0, 0, 1, 1], [], []>} : vector<16x256xf32>, vector<256x128xf32>, vector<16x128xf32> -> vector<16x128xf32>
    %c0_4 = arith.constant 0 : index
    %c0_5 = arith.constant 0 : index
    %11 = vector.load %arg5[%c0_4, %c0_5] : memref<1x128xf32, #tpu.memory_space<vmem>>, vector<1x128xf32>
    %12 = vector.broadcast %11 : vector<1x128xf32> to vector<16x128xf32>
    %13 = arith.addf %10, %12 : vector<16x128xf32>
    %14 = vector.extract_strided_slice %4 {offsets = [2, 0], sizes = [16, 128], strides = [1, 1]} : vector<22x128xf32> to vector<16x128xf32>
    %15 = vector.extract_strided_slice %4 {offsets = [3, 0], sizes = [16, 128], strides = [1, 1]} : vector<22x128xf32> to vector<16x128xf32>
    %16 = tpu.concatenate %14, %15 in 1 : vector<16x128xf32>, vector<16x128xf32> -> vector<16x256xf32>
    %c1 = arith.constant 1 : index
    %c0_6 = arith.constant 0 : index
    %c0_7 = arith.constant 0 : index
    %17 = vector.load %arg3[%c1, %c0_6, %c0_7] : memref<3x256x128xf32, #tpu.memory_space<vmem>>, vector<1x256x128xf32>
    %18 = vector.shape_cast %17 : vector<1x256x128xf32> to vector<256x128xf32>
    %cst_8 = arith.constant dense<0.000000e+00> : vector<16x128xf32>
    %19 = tpu.matmul %16, %18, %cst_8 {dimension_numbers = #tpu.dot_dimension_numbers<[1], [0], [0], [1], [0, 0, 1, 1], [], []>} : vector<16x256xf32>, vector<256x128xf32>, vector<16x128xf32> -> vector<16x128xf32>
    %20 = arith.addf %13, %19 : vector<16x128xf32>
    %21 = vector.extract_strided_slice %4 {offsets = [4, 0], sizes = [16, 128], strides = [1, 1]} : vector<22x128xf32> to vector<16x128xf32>
    %22 = vector.extract_strided_slice %4 {offsets = [5, 0], sizes = [16, 128], strides = [1, 1]} : vector<22x128xf32> to vector<16x128xf32>
    %23 = tpu.concatenate %21, %22 in 1 : vector<16x128xf32>, vector<16x128xf32> -> vector<16x256xf32>
    %c2 = arith.constant 2 : index
    %c0_9 = arith.constant 0 : index
    %c0_10 = arith.constant 0 : index
    %24 = vector.load %arg3[%c2, %c0_9, %c0_10] : memref<3x256x128xf32, #tpu.memory_space<vmem>>, vector<1x256x128xf32>
    %25 = vector.shape_cast %24 : vector<1x256x128xf32> to vector<256x128xf32>
    %cst_11 = arith.constant dense<0.000000e+00> : vector<16x128xf32>
    %26 = tpu.matmul %23, %25, %cst_11 {dimension_numbers = #tpu.dot_dimension_numbers<[1], [0], [0], [1], [0, 0, 1, 1], [], []>} : vector<16x256xf32>, vector<256x128xf32>, vector<16x128xf32> -> vector<16x128xf32>
    %27 = arith.addf %20, %26 : vector<16x128xf32>
    %28 = vector.extract_strided_slice %4 {offsets = [6, 0], sizes = [16, 128], strides = [1, 1]} : vector<22x128xf32> to vector<16x128xf32>
    %c0_12 = arith.constant 0 : index
    %c0_13 = arith.constant 0 : index
    %29 = vector.load %arg4[%c0_12, %c0_13] : memref<128x128xf32, #tpu.memory_space<vmem>>, vector<128x128xf32>
    %cst_14 = arith.constant dense<0.000000e+00> : vector<16x128xf32>
    %30 = tpu.matmul %28, %29, %cst_14 {dimension_numbers = #tpu.dot_dimension_numbers<[1], [0], [0], [1], [0, 0, 1, 1], [], []>} : vector<16x128xf32>, vector<128x128xf32>, vector<16x128xf32> -> vector<16x128xf32>
    %31 = arith.addf %27, %30 : vector<16x128xf32>
    %32 = arith.negf %31 : vector<16x128xf32>
    %33 = math.exp %32 : vector<16x128xf32>
    %cst_15 = arith.constant 1.000000e+00 : f32
    %34 = vector.broadcast %cst_15 : f32 to vector<16x128xf32>
    %35 = arith.addf %34, %33 : vector<16x128xf32>
    %36 = arith.divf %34, %35 : vector<16x128xf32>
    %37 = arith.mulf %31, %36 : vector<16x128xf32>
    %c0_16 = arith.constant 0 : index
    %c0_17 = arith.constant 0 : index
    %c0_18 = arith.constant 0 : index
    %38 = vector.load %arg6[%c0_16, %c0_17, %c0_18] : memref<1x16x128xf32, #tpu.memory_space<vmem>>, vector<1x16x128xf32>
    %39 = vector.shape_cast %38 : vector<1x16x128xf32> to vector<16x128xf32>
    %40 = vector.shape_cast %37 : vector<16x128xf32> to vector<1x16x128xf32>
    tpu.vector_store %arg6[%c0_16, %c0_17, %c0_18], %40 {strides = array<i32>} : memref<1x16x128xf32, #tpu.memory_space<vmem>>, vector<1x16x128xf32>,
    return
  }
  func.func @transform_0(%arg0: i32, %arg1: i32) -> (i32, i32, i32) {
    %c0_i32 = arith.constant 0 : i32
    %c0_i32_0 = arith.constant 0 : i32
    %c0_i32_1 = arith.constant 0 : i32
    return %arg0, %c0_i32, %c0_i32_0 : i32, i32, i32
  }
  func.func @transform_1(%arg0: i32, %arg1: i32) -> (i32, i32, i32) {
    %c0_i32 = arith.constant 0 : i32
    %c0_i32_0 = arith.constant 0 : i32
    %c0_i32_1 = arith.constant 0 : i32
    %c0_i32_2 = arith.constant 0 : i32
    return %c0_i32, %c0_i32_0, %c0_i32_1 : i32, i32, i32
  }
  func.func @transform_2(%arg0: i32, %arg1: i32) -> (i32, i32) {
    %c0_i32 = arith.constant 0 : i32
    %c0_i32_0 = arith.constant 0 : i32
    %c0_i32_1 = arith.constant 0 : i32
    return %c0_i32, %c0_i32_0 : i32, i32
  }
  func.func @transform_3(%arg0: i32, %arg1: i32) -> (i32, i32) {
    %c0_i32 = arith.constant 0 : i32
    %c0_i32_0 = arith.constant 0 : i32
    %c0_i32_1 = arith.constant 0 : i32
    return %c0_i32, %c0_i32_0 : i32, i32
  }
  func.func @transform_4(%arg0: i32, %arg1: i32) -> (i32, i32, i32) {
    %c0_i32 = arith.constant 0 : i32
    %c0_i32_0 = arith.constant 0 : i32
    return %arg0, %arg1, %c0_i32 : i32, i32, i32
  }
}

</mosaic_0001>

<bundles_post_ra>
// kernel: tpu_custom_call.1
= control target key start
LH: loop header
LB: loop body
LE: loop exit
PB: predicated region body
PF: predicated region fallthrough
CT: control target
= control target key end

     0   :  { %9 = vsyncpa [#allocation3], 0  ;;  %s1516_s0 = inlined_call_operand.vmem [shape: f32[2,22,128], index: 0, kind: input, shape index: {}]   ;;  %s1517_s1 = inlined_call_operand.hbm [shape: f32[3,256,128], index: 1, kind: input, shape index: {}]   ;;  %s1518_s2 = inlined_call_operand.hbm [shape: f32[128,128], index: 2, kind: input, shape index: {}]   ;;  %s1519_s3 = inlined_call_operand.vmem [shape: f32[1,128], index: 3, kind: input, shape index: {}]   ;;  %s1520_s4 = inlined_call_operand.hbm [shape: f32[2,16,128], index: 4, kind: output, shape index: {}]  }
   0x1   :  { %10 = vsyncpa [#allocation6], 0 }
   0x2   :  { %11 = vsyncpa [#allocation4], 0 }
   0x3   :  { %13 = vsyncpa [#allocation4 + $0x1], 0  ;;  %s1297_s15 = smov 0   ;;  %s1299_s16 = smov 0  }
   0x4   :  { %s1301_s17 = smov 0   ;;  %s1303_s18 = smov 0  }
   0x5   :  { %s1305_s19 = smov 0   ;;  %s1307_s20 = smov 0  }
   0x6 LB: > { %s851_s21 = sadd.s32 4294967295, %s1263_s20   ;;  %s852_s22 = sadd.s32 4294967294, %s1263_s20   ;;  %s1263_s20 = sphi %s1307_s20, %s19_s20   ;;  %s1259_s19 = sphi %s1305_s19, %s1533_s19   ;;  %s1255_s18 = sphi %s1303_s18, %s1532_s18   ;;  %s1251_s17 = sphi %s1301_s17, %s1531_s17   ;;  %s1247_s16 = sphi %s1299_s16, %s1530_s16   ;;  %s1243_s15 = sphi %s1297_s15, %s1529_s15  }
   0x7   : > { %s31_s23 = sadd.s32 1, %s1259_s19  ;;  %s129_s24 = sadd.s32 1, %s1251_s17 }
   0x8   : > { %p33_p0 = scmp.ge.s32.totalorder %s31_s23, 2  ;;  %p139_p1 = scmp.ne.s32.totalorder %s1251_s17, %s1247_s16 }
   0x9   : > { %p140_p2 = scmp.eq.s32.totalorder %s851_s21, 1  ;;  %p145_p3 = scmp.ne.s32.totalorder %s1247_s16, %s1243_s15 }
   0xa   : > { %s1535_s23 = smov (%p33_p0, %s31_s23), 0  ;;  %p146_p5 = scmp.eq.s32.totalorder %s852_s22, 1 }
   0xb   : > { %p1337_p4 = por %p140_p2, %p139_p1  ;;  %s124_s26 = ssub.s32 %s1259_s19, %s1535_s23 }
   0xc   : > { %p853_p6 = scmp.ge.s32.totalorder %s1263_s20, 1  ;;  %p127_p7 = scmp.eq.s32.totalorder %s124_s26, 0 }
   0xd   : > { %s1522_s25 = scalar_select %p1337_p4, 1, 0 }
   0xe   : > { %p1344_p8 = por %p146_p5, %p145_p3  ;;  %p153_p9 = scmp.lt.s32.totalorder %s1263_s20, 3 }
   0xf   : > { %s1350_s28 = scalar_select %p127_p7, %s1251_s17, %s129_s24  }
  0x10   : > { %s1523_s27 = scalar_select %p1344_p8, 1, 0 }
  0x11   : > { %p1352_p10 = pnand %p853_p6, %p153_p9  ;;  %p1356_p11 = scmp.eq.s32.totalorder %s851_s21, 0 }
  0x12   : > { %s1265_s5 = smov [#allocation2]   ;;  %s1266_s8 = smov [#allocation5]  }
  0x13   : > { %p1049_p12 = pneg %p1352_p10  ;;  %s165_s6 = sshll.u32 %s1265_s5, 4  ;;  %s166_s6 = int_to_ptr.vmem [resolvable:$true] %s165_s6 }
  0x14   : > { %s178_s9 = sshll.u32 %s1266_s8, 4  ;;  %s1138_s10 = scalar_lea.vmem %s166_s6, 12288  ;;  %s179_s9 = int_to_ptr.vmem [resolvable:$true] %s178_s9 }
  0x15   : > { %p1364_p13 = pnand %p1356_p11, %p1049_p12  ;;  %p1139_p1 = scmp.ne.s32.totalorder %s166_s6, %s1138_s10 }
  0x16   : > { %p1146_p5 = scmp.lt.s32.totalorder %s166_s6, %s166_s6  ;;  %p1147_p6 = scmp.lt.s32.totalorder %s1138_s10, %s1138_s10 }
  0x17   : > { %p1129_p0 = pneg %p1364_p13 }
  0x18   : > { %p1148_p7 = por %p1147_p6, %p1146_p5 }
  0x19   : > { %p1141_p2 = pnand %p1139_p1, %p1129_p0 }
  0x1b   : > { %p1142_p3 = pneg %p1141_p2 }
  0x1d   : > { %p1149_p9 = pnand %p1148_p7, %p1142_p3 }
  0x1f   : > { %1152 = shalt.err (!%p1149_p9)
}
  0x20   : > { %s1267_s11 = smov 128   ;;  %s1268_s12 = smov 8  }
  0x21   : > { %1052 = dma.hbm_to_vmem [thread:$0]  (!%p1364_p13), %s1517_s1, 12288, %s166_s6, [#allocation3], %s1267_s11, %s1267_s11, %s1268_s12  }
  0x22   : > { %s1164_s21 = scalar_lea.vmem %s179_s9, 2048  ;;  %p1172_p8 = scmp.lt.s32.totalorder %s179_s9, %s179_s9 }
  0x23   : > { %p1165_p12 = scmp.ne.s32.totalorder %s179_s9, %s1164_s21  ;;  %p1173_p4 = scmp.lt.s32.totalorder %s1164_s21, %s1164_s21 }
  0x25   : > { %p1167_p1 = pnand %p1165_p12, %p1129_p0  ;;  %p1174_p5 = por %p1173_p4, %p1172_p8 }
  0x27   : > { %p1168_p2 = pneg %p1167_p1 }
  0x29   : > { %p1175_p3 = pnand %p1174_p5, %p1168_p2 }
  0x2b   : > { %1178 = shalt.err (!%p1175_p3)
}
  0x2c   : > { %1055 = dma.hbm_to_vmem [thread:$0]  (!%p1364_p13), %s1518_s2, 2048, %s179_s9, [#allocation6], %s1267_s11, %s1267_s11, %s1268_s12  }
  0x2d   : > { %205 = sbr.rel (%p1352_p10) target bundleno = 374 (0x176), region = 36 }
  0x32   : > { %1230 = dma.done.wait (%p1356_p11), [#allocation3], 12288  }
  0x33   : > { %1232 = vsyncadd (%p1356_p11), [#allocation3], 4294955008 }
  0x34   : > { %1234 = dma.done.wait (%p1356_p11), [#allocation6], 2048  }
  0x35   : > { %1236 = vsyncadd (%p1356_p11), [#allocation6], 4294965248  ;;  %v288_v0 = vld [vmem:[#allocation2 + $0xf8] sm:$0xff]  ;;  %v287_v2 = vld [vmem:[#allocation2 + $0xf0] sm:$0xff]  ;;  %p235_p4 = scmp.lt.s32.totalorder %s1255_s18, 1  ;;  %vm249_vm0 = vcmask 1046528  }
  0x36   : > { %v272_v1 = vld [vmem:[#allocation2 + $0x78] sm:$0xff]  ;;  %871 = vmatprep.subr.mxu0 %v288_v0  ;;  %v271_v4 = vld [vmem:[#allocation2 + $0x70] sm:$0xff]  ;;  %v286_v6 = vld [vmem:[#allocation2 + $0xe8] sm:$0xff]  ;;  %vm404_vm1 = vcmask 1045504   ;;  %vm529_vm2 = vcmask 1043456   ;;  %vm637_vm3 = vcmask 1041408  }
  0x37   : > { %v403_v3 = vld [vmem:[#allocation2 + $0x1f8] sm:$0xff]  ;;  %872 = vmatpush3.msra.mxu0 %v272_v1  ;;  %v402_v7 = vld [vmem:[#allocation2 + $0x1f0] sm:$0xff]  ;;  %v270_v8 = vld [vmem:[#allocation2 + $0x68] sm:$0xff]  ;;  %s1400_s26 = scalar_select %p235_p4, %s1255_s18, 1 }
  0x38   : > { %v387_v5 = vld [vmem:[#allocation2 + $0x178] sm:$0xff]  ;;  %909 = vmatprep.subr.mxu1 %v403_v3  ;;  %873 = vmatprep.subr.mxu0 %v287_v2  ;;  %v386_v9 = vld [vmem:[#allocation2 + $0x170] sm:$0xff]  ;;  %v401_v10 = vld [vmem:[#allocation2 + $0x1e8] sm:$0xff]  ;;  %s232_s9 = sand.u32 1, %s1247_s16   ;;  %s870_s13 = sshll.u32 %s1255_s18, 8 }
  0x39   : > { %910 = vmatpush3.msra.mxu1 %v387_v5  ;;  %874 = vmatpush3.msra.mxu0 %v271_v4  ;;  %v285_v11 = vld [vmem:[#allocation2 + $0xe0] sm:$0xff]  ;;  %v385_v12 = vld [vmem:[#allocation2 + $0x168] sm:$0xff]  ;;  %v284_v15 = vld [vmem:[#allocation2 + $0xd8] sm:$0xff]  ;;  %s1038_s29 = smul.u32 24, %s1400_s26  ;;  %s860_s10 = sshll.u32 %s232_s9, 4 }
  0x3a   : > { %911 = vmatprep.subr.mxu1 %v402_v7  ;;  %875 = vmatprep.subr.mxu0 %v286_v6  ;;  %v269_v13 = vld [vmem:[#allocation2 + $0x60] sm:$0xff]  ;;  %v268_v17 = vld [vmem:[#allocation2 + $0x58] sm:$0xff]  ;;  %v283_v19 = vld [vmem:[#allocation2 + $0xd0] sm:$0xff]  ;;  %s234_s11 = scalar_lea.vmem [#allocation7], %s860_s10  ;;  %s1469_s22 = scalar_lea.hbm %s1520_s4, %s870_s13 }
  0x3b   : > { %912 = vmatpush3.msra.mxu1 %v386_v9  ;;  %v400_v14 = vld [vmem:[#allocation2 + $0x1e0] sm:$0xff]  ;;  %876 = vmatpush3.msra.mxu0 %v270_v8  ;;  %v399_v18 = vld [vmem:[#allocation2 + $0x1d8] sm:$0xff]  ;;  %v267_v21 = vld [vmem:[#allocation2 + $0x50] sm:$0xff]  ;;  %s239_s6 = scalar_lea.vmem %s1516_s0, %s1038_s29  ;;  %s754_s12 = sshll.u32 %s234_s11, 4  ;;  %s1464_s12 = int_to_ptr.vmem [resolvable:$true] %s754_s12 }
  0x3c   : > { %913 = vmatprep.subr.mxu1 %v401_v10  ;;  %v384_v16 = vld [vmem:[#allocation2 + $0x160] sm:$0xff]  ;;  %877 = vmatprep.subr.mxu0 %v285_v11  ;;  %v383_v20 = vld [vmem:[#allocation2 + $0x158] sm:$0xff]  ;;  %v398_v22 = vld [vmem:[#allocation2 + $0x1d0] sm:$0xff]  ;;  %s1471_s24 = scalar_lea.sflag [#allocation4], %s232_s9  ;;  %s1179_s26 = scalar_lea.vmem %s1464_s12, 256 }
  0x3d   : > { %914 = vmatpush3.msra.mxu1 %v385_v12  ;;  %878 = vmatpush3.msra.mxu0 %v269_v13  ;;  %v282_v23 = vld [vmem:[#allocation2 + $0xc8] sm:$0xff]  ;;  %v382_v24 = vld [vmem:[#allocation2 + $0x150] sm:$0xff]  ;;  %v281_v27 = vld [vmem:[#allocation2 + $0xc0] sm:$0xff]  ;;  %p1180_p8 = scmp.ne.s32.totalorder %s1464_s12, %s1179_s26  ;;  %p1527_p10 = scmp.ne.s32.totalorder %s1522_s25, 0 }
  0x3e   : > { %915 = vmatprep.subr.mxu1 %v400_v14  ;;  %879 = vmatprep.subr.mxu0 %v284_v15  ;;  %v266_v25 = vld [vmem:[#allocation2 + $0x48] sm:$0xff]  ;;  %v265_v29 = vld [vmem:[#allocation2 + $0x40] sm:$0xff]  ;;  %v280_v31 = vld [vmem:[#allocation2 + $0xb8] sm:$0xff]  ;;  %s1269_s18 = smov [#allocation7]  }
  0x3f   : > { %916 = vmatpush3.msra.mxu1 %v384_v16  ;;  %880 = vmatpush3.msra.mxu0 %v268_v17  ;;  %v397_v26 = vld [vmem:[#allocation2 + $0x1c8] sm:$0xff]  ;;  %v396_v30 = vld [vmem:[#allocation2 + $0x1c0] sm:$0xff]  ;;  %v264_v33 = vld [vmem:[#allocation2 + $0x38] sm:$0xff]  ;;  %p1181_p11 = pnand %p1180_p8, %p1527_p10  ;;  %s1183_s29 = sshll.u32 %s1269_s18, 4  ;;  %s1184_s29 = int_to_ptr.vmem [resolvable:$false] %s1183_s29 }
  0x40   : > { %917 = vmatprep.subr.mxu1 %v399_v18  ;;  %881 = vmatprep.subr.mxu0 %v283_v19  ;;  %v381_v28 = vld [vmem:[#allocation2 + $0x148] sm:$0xff]  ;;  %v380_v32 = vld [vmem:[#allocation2 + $0x140] sm:$0xff]  ;;  %v395_v34 = vld [vmem:[#allocation2 + $0x1b8] sm:$0xff]  ;;  %s1185_s30 = scalar_lea.vmem %s1184_s29, 512  ;;  %p1186_p0 = scmp.lt.s32.totalorder %s1464_s12, %s1184_s29 }
  0x41   : > { %918 = vmatpush3.msra.mxu1 %v383_v20  ;;  %882 = vmatpush3.msra.mxu0 %v267_v21  ;;  %v279_v35 = vld [vmem:[#allocation2 + $0xb0] sm:$0xff]  ;;  %v379_v36 = vld [vmem:[#allocation2 + $0x138] sm:$0xff]  ;;  %v278_v39 = vld [vmem:[#allocation2 + $0xa8] sm:$0xff]  ;;  %p1182_p13 = pneg %p1181_p11  ;;  %p1187_p6 = scmp.lt.s32.totalorder %s1185_s30, %s1179_s26 }
  0x42   : > { %919 = vmatprep.subr.mxu1 %v398_v22  ;;  %883 = vmatprep.subr.mxu0 %v282_v23  ;;  %v263_v37 = vld [vmem:[#allocation2 + $0x30] sm:$0xff]  ;;  %v262_v41 = vld [vmem:[#allocation2 + $0x28] sm:$0xff]  ;;  %v277_v42 = vld [vmem:[#allocation2 + $0xa0] sm:$0xff] }
  0x43   : > { %920 = vmatpush3.msra.mxu1 %v382_v24  ;;  %884 = vmatpush3.msra.mxu0 %v266_v25  ;;  %v394_v38 = vld [vmem:[#allocation2 + $0x1b0] sm:$0xff]  ;;  %v393_v43 = vld [vmem:[#allocation2 + $0x1a8] sm:$0xff]  ;;  %v1406_v45 = vld [vmem:[%s239_s6] sm:$0xff]  ;;  %p1188_p7 = por %p1187_p6, %p1186_p0 }
  0x44   : > { %921 = vmatprep.subr.mxu1 %v397_v26  ;;  %885 = vmatprep.subr.mxu0 %v281_v27  ;;  %v378_v40 = vld [vmem:[#allocation2 + $0x130] sm:$0xff]  ;;  %v377_v44 = vld [vmem:[#allocation2 + $0x128] sm:$0xff]  ;;  %v261_v47 = vld [vmem:[#allocation2 + $0x20] sm:$0xff]  ;;  %v250_v50 = vrot.slane %v1406_v45, 1  ;;  %v405_v8 = vrot.slane %v1406_v45, 2 }
  0x45   : > { %922 = vmatpush3.msra.mxu1 %v381_v28  ;;  %886 = vmatpush3.msra.mxu0 %v265_v29  ;;  %v1408_v46 = vld [vmem:[%s239_s6 + $0x8] sm:$0xff]  ;;  %v392_v48 = vld [vmem:[#allocation2 + $0x1a0] sm:$0xff]  ;;  %v1410_v49 = vld [vmem:[%s239_s6 + $0x10] sm:$0x3f]  ;;  %p1189_p9 = pnand %p1188_p7, %p1182_p13 }
  0x46   : > { %923 = vmatprep.subr.mxu1 %v396_v30  ;;  %887 = vmatprep.subr.mxu0 %v280_v31  ;;  %v251_v51 = vrot.slane %v1408_v46, 1  ;;  %v276_v52 = vld [vmem:[#allocation2 + $0x98] sm:$0xff]  ;;  %v376_v53 = vld [vmem:[#allocation2 + $0x120] sm:$0xff]  ;;  %v1415_v54 = vrot.slane %v1410_v49, 1  ;;  %v275_v57 = vld [vmem:[#allocation2 + $0x90] sm:$0xff]  ;;  %v406_v9 = vrot.slane %v1408_v46, 2 }
  0x47   : > { %924 = vmatpush3.msra.mxu1 %v380_v32  ;;  %888 = vmatpush3.msra.mxu0 %v264_v33  ;;  %v260_v55 = vld [vmem:[#allocation2 + $0x18] sm:$0xff]  ;;  %v259_v59 = vld [vmem:[#allocation2 + $0x10] sm:$0xff]  ;;  %v274_v63 = vld [vmem:[#allocation2 + $0x88] sm:$0xff] }
  0x48   : > { %925 = vmatprep.subr.mxu1 %v395_v34  ;;  %889 = vmatprep.subr.mxu0 %v279_v35  ;;  %v391_v56 = vld [vmem:[#allocation2 + $0x198] sm:$0xff]  ;;  %v390_v60 = vld [vmem:[#allocation2 + $0x190] sm:$0xff]  ;;  %v1417_v61 = vsel %vm249_vm0, %v250_v50, %v251_v51  ;;  %v1420_v62 = vsel %vm249_vm0, %v251_v51, %v1415_v54  ;;  %v258_v1 = vld [vmem:[#allocation2 + $0x8] sm:$0xff]  ;;  %v407_v15 = vsel %vm404_vm1, %v405_v8, %v406_v9 }
  0x49   : > { %926 = vmatpush3.msra.mxu1 %v379_v36  ;;  %890 = vmatpush3.msra.mxu0 %v263_v37  ;;  %v375_v58 = vld [vmem:[#allocation2 + $0x118] sm:$0xff]  ;;  %v374_v0 = vld [vmem:[#allocation2 + $0x110] sm:$0xff]  ;;  %v389_v2 = vld [vmem:[#allocation2 + $0x188] sm:$0xff]  ;;  %v408_v4 = vrot.slane %v1417_v61, 2  ;;  %v409_v5 = vrot.slane %v1420_v62, 2 }
  0x4a   : > { %927 = vmatprep.subr.mxu1 %v394_v38  ;;  %891 = vmatprep.subr.mxu0 %v278_v39  ;;  %v273_v3 = vld [vmem:[#allocation2 + $0x80] sm:$0xff]  ;;  %v373_v7 = vld [vmem:[#allocation2 + $0x108] sm:$0xff]  ;;  %v528_v11 = vld [vmem:[#allocation2 + $0x2f8] sm:$0xff] }
  0x4b   : > { %928 = vmatpush3.msra.mxu1 %v378_v40  ;;  %892 = vmatpush3.msra.mxu0 %v262_v41  ;;  %v257_v6 = vld [vmem:[#allocation2] sm:$0xff]  ;;  %v410_v13 = vsel %vm404_vm1, %v408_v4, %v409_v5  ;;  %v512_v14 = vld [vmem:[#allocation2 + $0x278] sm:$0xff]  ;;  %v527_v16 = vld [vmem:[#allocation2 + $0x2f0] sm:$0xff] }
  0x4c   : > { %929 = vmatprep.subr.mxu1 %v393_v43  ;;  %893 = vmatprep.subr.mxu0 %v277_v42  ;;  %v388_v10 = vld [vmem:[#allocation2 + $0x180] sm:$0xff]  ;;  %v511_v17 = vld [vmem:[#allocation2 + $0x270] sm:$0xff]  ;;  %v636_v18 = vld [vmem:[#allocation5 + $0x78] sm:$0xff] }
  0x4d   : > { %930 = vmatpush3.msra.mxu1 %v377_v44  ;;  %894 = vmatpush3.msra.mxu0 %v261_v47  ;;  %v372_v12 = vld [vmem:[#allocation2 + $0x100] sm:$0xff]  ;;  %v526_v19 = vld [vmem:[#allocation2 + $0x2e8] sm:$0xff]  ;;  %v635_v21 = vld [vmem:[#allocation5 + $0x70] sm:$0xff] }
  0x4e   : > { %931 = vmatprep.subr.mxu1 %v392_v48  ;;  %895 = vmatprep.subr.mxu0 %v276_v52  ;;  %v510_v20 = vld [vmem:[#allocation2 + $0x268] sm:$0xff]  ;;  %v525_v22 = vld [vmem:[#allocation2 + $0x2e0] sm:$0xff]  ;;  %v524_v25 = vld [vmem:[#allocation2 + $0x2d8] sm:$0xff]  ;;  %v413_v52 = vrot.slane %v1415_v54, 2 }
  0x4f   : > { %932 = vmatpush3.msra.mxu1 %v376_v53  ;;  %896 = vmatpush3.msra.mxu0 %v260_v55  ;;  %v509_v23 = vld [vmem:[#allocation2 + $0x260] sm:$0xff]  ;;  %v634_v24 = vld [vmem:[#allocation5 + $0x68] sm:$0xff]  ;;  %v508_v26 = vld [vmem:[#allocation2 + $0x258] sm:$0xff] }
  0x50   : > { %933 = vmatprep.subr.mxu1 %v391_v56  ;;  %897 = vmatprep.subr.mxu0 %v275_v57  ;;  %v633_v27 = vld [vmem:[#allocation5 + $0x60] sm:$0xff]  ;;  %v523_v28 = vld [vmem:[#allocation2 + $0x2d0] sm:$0xff]  ;;  %v632_v30 = vld [vmem:[#allocation5 + $0x58] sm:$0xff]  ;;  %v411_v56 = vrot.slane %v1410_v49, 2 }
  0x51   : > { %934 = vmatpush3.msra.mxu1 %v375_v58  ;;  %898 = vmatpush3.msra.mxu0 %v259_v59  ;;  %v507_v29 = vld [vmem:[#allocation2 + $0x250] sm:$0xff]  ;;  %v522_v31 = vld [vmem:[#allocation2 + $0x2c8] sm:$0xff]  ;;  %v521_v34 = vld [vmem:[#allocation2 + $0x2c0] sm:$0xff]  ;;  %v414_v59 = vsel %vm404_vm1, %v409_v5, %v413_v52  ;;  %v530_v5 = vrot.slane %v1406_v45, 4 }
  0x52   : > { %935 = vmatprep.subr.mxu1 %v390_v60  ;;  %899 = vmatprep.subr.mxu0 %v274_v63  ;;  %v506_v32 = vld [vmem:[#allocation2 + $0x248] sm:$0xff]  ;;  %v631_v33 = vld [vmem:[#allocation5 + $0x50] sm:$0xff]  ;;  %v505_v35 = vld [vmem:[#allocation2 + $0x240] sm:$0xff]  ;;  %v533_v63 = vrot.slane %v1417_v61, 4 }
  0x53   : > { %936 = vmatpush3.msra.mxu1 %v374_v0  ;;  %900 = vmatpush3.msra.mxu0 %v258_v1  ;;  %v630_v36 = vld [vmem:[#allocation5 + $0x48] sm:$0xff]  ;;  %v520_v37 = vld [vmem:[#allocation2 + $0x2b8] sm:$0xff]  ;;  %v629_v39 = vld [vmem:[#allocation5 + $0x40] sm:$0xff]  ;;  %v412_v0 = vsel %vm404_vm1, %v406_v9, %v411_v56 }
  0x54   : > { %937 = vmatprep.subr.mxu1 %v389_v2  ;;  %901 = vmatprep.subr.mxu0 %v273_v3  ;;  %v504_v38 = vld [vmem:[#allocation2 + $0x238] sm:$0xff]  ;;  %v519_v40 = vld [vmem:[#allocation2 + $0x2b0] sm:$0xff]  ;;  %v518_v43 = vld [vmem:[#allocation2 + $0x2a8] sm:$0xff]  ;;  %v534_v2 = vrot.slane %v1420_v62, 4 }
  0x55   : > { %360 = vmatprep.mubr.f32.mxu0 %v1417_v61  ;;  %902 = vmatpush3.msra.mxu0 %v257_v6  ;;  %v503_v41 = vld [vmem:[#allocation2 + $0x230] sm:$0xff]  ;;  %v628_v42 = vld [vmem:[#allocation5 + $0x38] sm:$0xff]  ;;  %v502_v44 = vld [vmem:[#allocation2 + $0x228] sm:$0xff]  ;;  %v531_v6 = vrot.slane %v1408_v46, 4 }
  0x56   : > { %938 = vmatpush3.msra.mxu1 %v373_v7  ;;  %361 = vmatmul.mubr.f32.vlgmr.msra.gmra.mxu0 %v1406_v45  ;;  %v627_v47 = vld [vmem:[#allocation5 + $0x30] sm:$0xff]  ;;  %v517_v48 = vld [vmem:[#allocation2 + $0x2a0] sm:$0xff]  ;;  %v626_v51 = vld [vmem:[#allocation5 + $0x28] sm:$0xff]  ;;  %v538_v7 = vrot.slane %v1415_v54, 4  ;;  %v536_v54 = vrot.slane %v1410_v49, 4 }
  0x57   : > { %939 = vmatprep.subr.mxu1 %v388_v10  ;;  %947 = vmatprep.subr.mxu0 %v528_v11  ;;  %v501_v50 = vld [vmem:[#allocation2 + $0x220] sm:$0xff]  ;;  %v516_v53 = vld [vmem:[#allocation2 + $0x298] sm:$0xff]  ;;  %v515_v57 = vld [vmem:[#allocation2 + $0x290] sm:$0xff]  ;;  %v639_v10 = vrot.slane %v1408_v46, 6  ;;  %v535_v11 = vsel %vm529_vm2, %v533_v63, %v534_v2 }
  0x58   : > { %940 = vmatpush3.msra.mxu1 %v372_v12  ;;  %483 = vmatprep.mubr.f32.mxu1 %v410_v13  ;;  %v500_v55 = vld [vmem:[#allocation2 + $0x218] sm:$0xff]  ;;  %v625_v58 = vld [vmem:[#allocation5 + $0x20] sm:$0xff]  ;;  %v499_v60 = vld [vmem:[#allocation2 + $0x210] sm:$0xff]  ;;  %v532_v12 = vsel %vm529_vm2, %v530_v5, %v531_v6 }
  0x59   : > { %948 = vmatpush3.msra.mxu0 %v512_v14  ;;  %484 = vmatmul.mubr.f32.vlgmr.msra.gmra.mxu1 %v407_v15  ;;  %v514_v1 = vld [vmem:[#allocation2 + $0x288] sm:$0xff]  ;;  %v624_v3 = vld [vmem:[#allocation5 + $0x18] sm:$0xff]  ;;  %v513_v61 = vld [vmem:[#allocation2 + $0x280] sm:$0xff]  ;;  %v641_v14 = vrot.slane %v1410_v49, 6 }
  0x5a   : > { %949 = vmatprep.subr.mxu0 %v527_v16  ;;  %1003 = vmatprep.subr.mxu1 %v636_v18  ;;  %v498_v4 = vld [vmem:[#allocation2 + $0x208] sm:$0xff]  ;;  %v623_v8 = vld [vmem:[#allocation5 + $0x10] sm:$0xff]  ;;  %v497_v9 = vld [vmem:[#allocation2 + $0x200] sm:$0xff]  ;;  %v537_v16 = vsel %vm529_vm2, %v531_v6, %v536_v54 }
  0x5b   : > { %950 = vmatpush3.msra.mxu0 %v511_v17  ;;  %1004 = vmatpush3.msra.mxu1 %v636_v18  ;;  %v622_v13 = vld [vmem:[#allocation5 + $0x8] sm:$0xff]  ;;  %v642_v17 = vsel %vm637_vm3, %v639_v10, %v641_v14 }
  0x5c   : > { %951 = vmatprep.subr.mxu0 %v526_v19  ;;  %1005 = vmatprep.subr.mxu1 %v635_v21 }
  0x5d   : > { %952 = vmatpush3.msra.mxu0 %v510_v20  ;;  %1006 = vmatpush3.msra.mxu1 %v635_v21 }
  0x5e   : > { %953 = vmatprep.subr.mxu0 %v525_v22  ;;  %1007 = vmatprep.subr.mxu1 %v634_v24 }
  0x5f   : > { %954 = vmatpush3.msra.mxu0 %v509_v23  ;;  %1008 = vmatpush3.msra.mxu1 %v634_v24  ;;  %v862_v23 = vld [vmem:[%s1519_s3] ss:$0 sm:$0xff] }
  0x60   : > { %955 = vmatprep.subr.mxu0 %v524_v25  ;;  %1009 = vmatprep.subr.mxu1 %v633_v27 }
  0x61   : > { %956 = vmatpush3.msra.mxu0 %v508_v26  ;;  %1010 = vmatpush3.msra.mxu1 %v633_v27 }
  0x62   : > { %957 = vmatprep.subr.mxu0 %v523_v28  ;;  %1011 = vmatprep.subr.mxu1 %v632_v30 }
  0x63   : > { %958 = vmatpush3.msra.mxu0 %v507_v29  ;;  %1012 = vmatpush3.msra.mxu1 %v632_v30 }
  0x64   : > { %959 = vmatprep.subr.mxu0 %v522_v31  ;;  %1013 = vmatprep.subr.mxu1 %v631_v33 }
  0x65   : > { %960 = vmatpush3.msra.mxu0 %v506_v32  ;;  %1014 = vmatpush3.msra.mxu1 %v631_v33 }
  0x66   : > { %961 = vmatprep.subr.mxu0 %v521_v34  ;;  %1015 = vmatprep.subr.mxu1 %v630_v36 }
  0x67   : > { %962 = vmatpush3.msra.mxu0 %v505_v35  ;;  %1016 = vmatpush3.msra.mxu1 %v630_v36 }
  0x68   : > { %963 = vmatprep.subr.mxu0 %v520_v37  ;;  %1017 = vmatprep.subr.mxu1 %v629_v39 }
  0x69   : > { %964 = vmatpush3.msra.mxu0 %v504_v38  ;;  %1018 = vmatpush3.msra.mxu1 %v629_v39 }
  0x6a   : > { %965 = vmatprep.subr.mxu0 %v519_v40  ;;  %1019 = vmatprep.subr.mxu1 %v628_v42 }
  0x6b   : > { %966 = vmatpush3.msra.mxu0 %v503_v41  ;;  %1020 = vmatpush3.msra.mxu1 %v628_v42 }
  0x6c   : > { %967 = vmatprep.subr.mxu0 %v518_v43  ;;  %1021 = vmatprep.subr.mxu1 %v627_v47 }
  0x6d   : > { %968 = vmatpush3.msra.mxu0 %v502_v44  ;;  %1022 = vmatpush3.msra.mxu1 %v627_v47 }
  0x6e   : > { %969 = vmatprep.subr.mxu0 %v517_v48  ;;  %1023 = vmatprep.subr.mxu1 %v626_v51 }
  0x6f   : > { %970 = vmatpush3.msra.mxu0 %v501_v50  ;;  %365 = vmatprep.mubr.f32.mxu0 %v1420_v62  ;;  %v638_v62 = vrot.slane %v1406_v45, 6  ;;  %v539_v45 = vsel %vm529_vm2, %v534_v2, %v538_v7 }
  0x70   : > { %971 = vmatprep.subr.mxu0 %v516_v53  ;;  %1024 = vmatpush3.msra.mxu1 %v626_v51 }
  0x71   : > { %972 = vmatpush3.msra.mxu0 %v500_v55  ;;  %1025 = vmatprep.subr.mxu1 %v625_v58  ;;  %v640_v15 = vsel %vm637_vm3, %v638_v62, %v639_v10 }
  0x72   : > { %366 = vmatmul.mubr.f32.gmra.mxu0 %v1408_v46  ;;  %973 = vmatprep.subr.mxu0 %v515_v57  ;;  %v621_v46 = vld [vmem:[#allocation5] sm:$0xff] }
  0x73   : > { %488 = vmatprep.mubr.f32.mxu1 %v414_v59  ;;  %974 = vmatpush3.msra.mxu0 %v499_v60 }
  0x74   : > { %1026 = vmatpush3.msra.mxu1 %v625_v58  ;;  %975 = vmatprep.subr.mxu0 %v514_v1 }
  0x75   : > { %489 = vmatmul.mubr.f32.gmra.mxu1 %v412_v0  ;;  %1027 = vmatprep.subr.mxu1 %v624_v3 }
  0x76   : > { %976 = vmatpush3.msra.mxu0 %v498_v4  ;;  %1028 = vmatpush3.msra.mxu1 %v624_v3 }
  0x77   : > { %977 = vmatprep.subr.mxu0 %v513_v61  ;;  %1029 = vmatprep.subr.mxu1 %v623_v8 }
  0x78   : > { %978 = vmatpush3.msra.mxu0 %v497_v9  ;;  %608 = vmatprep.mubr.f32.mxu0 %v535_v11 }
  0x79   : > { %1030 = vmatpush3.msra.mxu1 %v623_v8  ;;  %609 = vmatmul.mubr.f32.vlgmr.msra.gmra.mxu0 %v532_v12 }
  0x7a   : > { %1031 = vmatprep.subr.mxu1 %v622_v13  ;;  %613 = vmatprep.mubr.f32.mxu0 %v539_v45 }
  0x7b   : > { %1032 = vmatpush3.msra.mxu1 %v622_v13  ;;  %1035 = vmatprep.mubr.f32.mxu1 %v640_v15 }
  0x7c   : > { %1033 = vmatprep.subr.mxu1 %v621_v46 }
  0x7d   : > { %1034 = vmatpush3.msra.mxu1 %v621_v46  ;;  %614 = vmatmul.mubr.f32.gmra.mxu0 %v537_v16 }
  0x7e   : > { %1036 = vmatmul.mubr.f32.vlgmr.msra.gmra.mxu1 %v642_v17 }
 0x116   : > { %v903_v49 = vpop.f32.mrf.mxu0 }
 0x118   : > { %v904_v18 = vpop.f32.mrf.mxu0 }
 0x119   : > { %v941_v19 = vpop.f32.mrf.mxu1  ;;  %v905_v22 = vadd.f32 %v904_v18, %v903_v49 }
 0x11b   : > { %v942_v21 = vpop.f32.mrf.mxu1  ;;  %v363_v26 = vadd.f32 %v905_v22, %v862_v23 }
 0x11c   : > { %v943_v27 = vadd.f32 %v942_v21, %v941_v19 }
 0x11e   : > { %v494_v32 = vadd.f32 %v943_v27, %v363_v26 }
 0x132   : > { %v906_v20 = vpop.f32.mrf.mxu0 }
 0x134   : > { %v907_v24 = vpop.f32.mrf.mxu0 }
 0x135   : > { %v944_v25 = vpop.f32.mrf.mxu1  ;;  %v908_v28 = vadd.f32 %v907_v24, %v906_v20 }
 0x137   : > { %v945_v29 = vpop.f32.mrf.mxu1  ;;  %v368_v33 = vadd.f32 %v908_v28, %v862_v23 }
 0x138   : > { %v946_v34 = vadd.f32 %v945_v29, %v944_v25 }
 0x139   : > { %v979_v30 = vpop.f32.mrf.mxu0 }
 0x13a   : > { %v495_v41 = vadd.f32 %v946_v34, %v368_v33 }
 0x13b   : > { %v980_v31 = vpop.f32.mrf.mxu0 }
 0x13c   : > { %v981_v35 = vadd.f32 %v980_v31, %v979_v30 }
 0x13d   : > { %v982_v36 = vpop.f32.mrf.mxu0 }
 0x13e   : > { %v1037_v37 = vpop.f32.mrf.mxu1  ;;  %v619_v38 = vadd.f32 %v981_v35, %v494_v32 }
 0x13f   : > { %v983_v39 = vpop.f32.mrf.mxu0 }
 0x140   : > { %v711_v40 = vpop.f32.mrf.mxu1  ;;  %v984_v42 = vadd.f32 %v983_v39, %v982_v36 }
 0x141   : > { %v720_v43 = vadd.f32 %v711_v40, %v619_v38 }
 0x142   : > { %v620_v44 = vadd.f32 %v984_v42, %v495_v41 }
 0x143   : > { %v863_v47 = vmul.f32 -1.442695, %v720_v43 }
 0x144   : > { %v721_v48 = vadd.f32 %v1037_v37, %v620_v44 }
 0x145   : > { %1119 = vpow2.f32 %v863_v47 }
 0x146   : > { %v864_v50 = vmul.f32 -1.442695, %v721_v48 }
 0x148   : > { %1121 = vpow2.f32 %v864_v50 }
 0x152   : > { %v1120_v51 = vpop.eup %1119 }
 0x153   : > { %v728_v52 = vadd.f32 1.0, %v1120_v51 }
 0x155   : > { %1123 = vrcp.f32 %v728_v52  ;;  %v1122_v53 = vpop.eup %1121 }
 0x156   : > { %v729_v55 = vadd.f32 1.0, %v1122_v53 }
 0x158   : > { %1125 = vrcp.f32 %v729_v55 }
 0x162   : > { %v1124_v56 = vpop.eup %1123 }
 0x163   : > { %v734_v57 = vmul.f32 %v1124_v56, %v720_v43 }
 0x165   : > { %736 = vst [vmem:[%s234_s11] sm:$0xff] %v734_v57  ;;  %v1126_v58 = vpop.eup %1125 }
 0x166   : > { %v735_v59 = vmul.f32 %v1126_v58, %v721_v48 }
 0x168   : > { %737 = vst [vmem:[%s234_s11 + $0x8] sm:$0xff] %v735_v59 }
 0x169   : > { %1192 = shalt.err (!%p1189_p9)
}
 0x16a   : > { %s1193_s5 = scalar_lea.hbm %s1469_s22, 256  ;;  %s1197_s8 = scalar_lea.hbm %s1520_s4, 512 }
 0x16b   : > { %p1194_p12 = scmp.ne.s32.totalorder %s1469_s22, %s1193_s5  ;;  %p1198_p5 = scmp.lt.s32.totalorder %s1469_s22, %s1520_s4 }
 0x16c   : > { %p1199_p3 = scmp.lt.s32.totalorder %s1197_s8, %s1193_s5 }
 0x16d   : > { %p1195_p1 = pnand %p1194_p12, %p1527_p10 }
 0x16e   : > { %p1200_p4 = por %p1199_p3, %p1198_p5 }
 0x16f   : > { %p1196_p2 = pneg %p1195_p1 }
 0x171   : > { %p1201_p8 = pnand %p1200_p4, %p1196_p2 }
 0x173   : > { %1204 = shalt.err (!%p1201_p8)
}
 0x174   : > { %s1270_s11 = smov 128   ;;  %s1271_s13 = smov 8  }
 0x175   : > { %1047 = dma.vmem_to_hbm [thread:$0]  (%p1527_p10), %s1464_s12, 256, %s1469_s22, %s1471_s24, %s1270_s11, %s1270_s11, %s1271_s13  }
 0x176 PF: > { %p1064_p11 = scmp.ge.s32.totalorder %s1263_s20, 2  ;;  %s769_s14 = sand.u32 1, %s1243_s15  }
 0x177   : > { %p1528_p13 = scmp.ne.s32.totalorder %s1523_s27, 0  ;;  %s770_s21 = scalar_lea.sflag [#allocation4], %s769_s14 }
 0x179   : > { %p1057_p0 = pnand %p1064_p11, %p1528_p13 }
 0x17b   : > { %p1058_p6 = pneg %p1057_p0 }
 0x17d   : > { %1238 = dma.done.wait (%p1058_p6), %s770_s21, 256  }
 0x17e   : > { %1240 = vsyncadd (%p1058_p6), %s770_s21, 4294967040  ;;  %s19_s20 = sadd.s32 1, %s1263_s20   ;;  %s1529_s15 = smov %s1247_s16 }
 0x17f   : > { %p16_p7 = scmp.ge.s32.totalorder %s19_s20, 4   ;;  %s1530_s16 = smov %s1251_s17 }
 0x180   : > { %s1531_s17 = smov %s1350_s28  ;;  %s1532_s18 = smov %s1259_s19 }
 0x181   : > { %s1533_s19 = smov %s1535_s23  ;;  %18 = sbr.rel (!%p16_p7) target bundleno = 6 (0x6), region = 83 }
 0x186   :  { %775 = vsyncpa [#allocation3], 1 }
 0x187   :  { %777 = vsyncpa [#allocation3 + $0x1], 1 }
 0x188   :  { %778 = vsyncpa [#allocation6], 1 }
 0x189   :  { %779 = vsyncpa [#allocation4], 1 }
 0x18a   :  { %781 = vsyncpa [#allocation4 + $0x1], 1 }

</bundles_post_ra>
